<compile_context>
chip_gen: v6e
topology: v6e:2x2x1
jax: 0.10.0
libtpu: 0.0.40
codegen_flags: <defaults>
</compile_context>

<pallas_src>
import math

import jax
import jax.numpy as jnp
from jax.experimental import pallas as pl
from jax.experimental.pallas import tpu as pltpu


# --------------------------------------------------------------------------- #
# Kernel
# --------------------------------------------------------------------------- #
def _linear_bias_relu_kernel(x_ref, w_ref, b_ref, o_ref, acc_ref):
    """One (tm, tn) output tile, accumulated over the K grid axis.

    x_ref  : (tm, tk)  activation tile
    w_ref  : (tk, tn)  weight tile in canonical (in_features, out_features) layout
    b_ref  : (1,  tn)  f32 bias tile
    o_ref  : (tm, tn)  output tile (written on the last K step only)
    acc_ref: (tm, tn)  f32 accumulator scratch (persists across the K axis)
    """
    k = pl.program_id(2)

    @pl.when(k == 0)
    def _init():
        acc_ref[...] = jnp.zeros_like(acc_ref)

    # Canonical MXU feed: (tm, tk) @ (tk, tn), f32 accumulation.
    acc_ref[...] += jnp.dot(
        x_ref[...], w_ref[...], preferred_element_type=jnp.float32
    )

    @pl.when(k == pl.num_programs(2) - 1)
    def _finalize():
        y = acc_ref[...] + b_ref[...]                 # f32 epilogue
        o_ref[...] = jnp.maximum(y, 0.0).astype(o_ref.dtype)


# --------------------------------------------------------------------------- #
# Tiling heuristics
# --------------------------------------------------------------------------- #
def _round_up(a, b):
    return ((a + b - 1) // b) * b


def _vmem_capacity_bytes():
    """Physical VMEM per TensorCore; conservative fallback if query fails."""
    try:
        return int(pltpu.get_tpu_info().vmem_capacity_bytes)
    except Exception:
        return 64 * 1024 * 1024  # v7x-sized worst case


def _balanced_rows(m, cap):
    """M tile: full dim if small, else balanced multiple of 8."""
    if m <= cap:
        return m
    num = pl.cdiv(m, cap)
    return _round_up(pl.cdiv(m, num), 8)


def _balanced_cols(n, cap):
    """N tile: full dim if small; else prefer a lane-dense divisor of N."""
    if n <= cap:
        return n
    exact = next(
        (t for t in range(cap - cap % 128, 127, -128) if n % t == 0), 0
    )
    if exact >= 512:
        return exact
    num = pl.cdiv(n, cap)
    return _round_up(pl.cdiv(n, num), 128)


def _choose_tiles(m, k_p, n, cdt_bytes, out_bytes, vmem_limit):
    """Pick (tm, tk, tn): (8,128)-legal, K never ragged, fits the VMEM budget."""
    # K tile: full K when small, else the largest of {2048,1024,512} dividing
    # the (already padded) K — never below 512 so the accumulator RMW and the
    # ~0.35 us grid-step overhead stay amortized.
    if k_p <= 2048:
        tk = k_p
    else:
        tk = max(t for t in (2048, 1024, 512) if k_p % t == 0)

    big_chip = _vmem_capacity_bytes() >= 100 * 1024 * 1024  # v5e / v6e
    tm = _balanced_rows(m, 2048 if big_chip else 1024)
    tn = _balanced_cols(n, 1024)

    # VMEM fit check: double-buffered x/W/out tiles + f32 accumulator + bias.
    def footprint(tm_, tk_, tn_):
        return (2 * (tm_ * tk_ + tk_ * tn_) * cdt_bytes
                + 2 * tm_ * tn_ * out_bytes
                + tm_ * tn_ * 4
                + 2 * tn_ * 4)

    budget = int(vmem_limit * 0.8)
    while footprint(tm, tk, tn) > budget:
        if tk > 512 and tk % 1024 == 0 and k_p % (tk // 2) == 0:
            tk //= 2
        elif tm > 512 and tm % 16 == 0:
            tm //= 2
        elif tn > 512 and tn % 256 == 0:
            tn //= 2
        else:
            break
    return tm, tk, tn


# --------------------------------------------------------------------------- #
# Wrapper
# --------------------------------------------------------------------------- #
def column_parallel_linear(x, weight, bias, *, gather_output=True,
                           compute_dtype=jnp.bfloat16):
    """relu(x @ W^T + b).

    x      : (..., input_size)
    weight : (output_size, input_size)   -- PyTorch F.linear layout
    bias   : (output_size,)
    compute_dtype: dtype used for the streamed MXU operands when the inputs
        are float32 (default bf16: half the weight HBM bytes, full-rate MXU,
        f32 accumulation).  Pass None to keep exact input precision.
    """
    out_features, in_features = weight.shape
    assert x.shape[-1] == in_features
    assert bias.shape == (out_features,)

    lead = x.shape[:-1]
    m = math.prod(lead) if lead else 1
    out_dtype = x.dtype

    # Unified compute dtype (guards mixed x/W dtypes explicitly).
    in_dt = jnp.promote_types(x.dtype, weight.dtype)
    if compute_dtype is not None and in_dt == jnp.float32:
        cdt = jnp.dtype(compute_dtype)
    else:
        cdt = jnp.dtype(in_dt)

    x2d = x.reshape(m, in_features).astype(cdt)
    # One-time relayout (fused with the cast): feed the MXU canonically as
    # (K, N) so the kernel never needs a per-tile XLU transpose of the RHS.
    # TODO(synk): store the weight persistently in (K, N) so this leaves the
    #             per-call path entirely.
    w_kn = weight.T.astype(cdt)
    b2d = bias.reshape(1, out_features).astype(jnp.float32)

    # Zero-pad K once so the reduction axis is never ragged (OOB garbage along
    # K would contaminate real outputs) and tk always has a >=512 divisor.
    k_p = in_features if in_features <= 2048 else _round_up(in_features, 512)
    if k_p != in_features:
        x2d = jnp.pad(x2d, ((0, 0), (0, k_p - in_features)))
        w_kn = jnp.pad(w_kn, ((0, k_p - in_features), (0, 0)))

    vmem_cap = _vmem_capacity_bytes()
    vmem_limit = min(max(vmem_cap * 3 // 4, 48 * 1024 * 1024),
                     110 * 1024 * 1024)

    cdt_bytes = jnp.dtype(cdt).itemsize
    out_bytes = jnp.dtype(out_dtype).itemsize
    tm, tk, tn = _choose_tiles(m, k_p, out_features,
                               cdt_bytes, out_bytes, vmem_limit)
    # The reduction axis must never be ragged (OOB masking is only safe on M/N).
    assert k_p % tk == 0, (k_p, tk)

    grid = (pl.cdiv(m, tm), pl.cdiv(out_features, tn), pl.cdiv(k_p, tk))
    n_m_tiles, n_n_tiles = grid[0], grid[1]

    # Advisory cost estimate reflecting actual multi-pass HBM traffic:
    # W is re-read once per M tile, x once per N tile.
    flops = 2 * m * k_p * out_features
    bytes_accessed = (
        n_n_tiles * m * k_p * cdt_bytes
        + n_m_tiles * out_features * k_p * cdt_bytes
        + out_features * 4
        + m * out_features * out_bytes
    )

    out = pl.pallas_call(
        _linear_bias_relu_kernel,
        out_shape=jax.ShapeDtypeStruct((m, out_features), out_dtype),
        grid=grid,
        in_specs=[
            pl.BlockSpec((tm, tk), lambda i, j, k: (i, k)),   # activations
            pl.BlockSpec((tk, tn), lambda i, j, k: (k, j)),   # weight (K, N)
            pl.BlockSpec((1, tn), lambda i, j, k: (0, j)),    # bias row (f32)
        ],
        out_specs=pl.BlockSpec((tm, tn), lambda i, j, k: (i, j)),
        scratch_shapes=[pltpu.VMEM((tm, tn), jnp.float32)],
        compiler_params=pltpu.CompilerParams(
            # M/N tiles shard across TensorCores on v7x; K carries the
            # accumulator and must stay "arbitrary".
            dimension_semantics=("parallel", "parallel", "arbitrary"),
            vmem_limit_bytes=int(vmem_limit),
        ),
        cost_estimate=pl.CostEstimate(
            flops=int(flops), transcendentals=0,
            bytes_accessed=int(bytes_accessed),
        ),
    )(x2d, w_kn, b2d)

    out = out.reshape(*lead, out_features)

    # world_size == 1: GatherFromModelParallelRegion is the identity.
    # TODO(synk): for world_size > 1, implement the gather as a ring
    #             pltpu.make_async_remote_copy all-gather over MP peers.
    del gather_output
    return out


# --------------------------------------------------------------------------- #
# Self-test
# --------------------------------------------------------------------------- #
if __name__ == "__main__":
    key = jax.random.PRNGKey(0)
    k_x, k_w, k_x2, k_w2 = jax.random.split(key, 4)

    # ---- small shape consistent with the module (world_size = 1) ----
    batch, seq = 2, 8
    input_size, output_size = 32, 64

    xavier_std = (2.0 / (input_size + output_size)) ** 0.5   # xavier_normal_
    weight = xavier_std * jax.random.normal(
        k_w, (output_size, input_size), dtype=jnp.float32)
    bias = jnp.zeros((output_size,), dtype=jnp.float32)
    x = jax.random.normal(k_x, (batch, seq, input_size), dtype=jnp.float32)

    ref = jnp.maximum(
        jnp.einsum("bsk,nk->bsn", x, weight,
                   precision=jax.lax.Precision.HIGHEST) + bias, 0.0)

    # exact-precision path
    out_f32 = jax.block_until_ready(
        column_parallel_linear(x, weight, bias, compute_dtype=None))
    assert out_f32.shape == (batch, seq, output_size)
    assert out_f32.dtype == jnp.float32
    assert jnp.allclose(out_f32, ref, atol=1e-4, rtol=1e-4)

    # default path: f32 I/O, bf16 streamed operands, f32 accumulation
    out_def = jax.block_until_ready(column_parallel_linear(x, weight, bias))
    assert out_def.dtype == jnp.float32
    assert jnp.allclose(out_def, ref, atol=2e-2, rtol=2e-2)

    # native bf16 I/O path
    out_b16 = jax.block_until_ready(
        column_parallel_linear(x.astype(jnp.bfloat16),
                               weight.astype(jnp.bfloat16), bias))
    assert out_b16.dtype == jnp.bfloat16
    assert jnp.allclose(out_b16.astype(jnp.float32), ref, atol=2e-2, rtol=2e-2)

    # ---- larger shape exercising multi M/N tiles, multi K steps, K padding
    #      (2300 -> 2560) and balanced ragged tails ----
    b2, s2, in2, out2 = 5, 416, 2300, 1536          # M = 2080
    w2 = (2.0 / (in2 + out2)) ** 0.5 * jax.random.normal(
        k_w2, (out2, in2), dtype=jnp.float32)
    b2vec = 0.01 * jnp.arange(out2, dtype=jnp.float32) - 5.0
    x2 = jax.random.normal(k_x2, (b2, s2, in2), dtype=jnp.float32)
    ref2 = jnp.maximum(
        jnp.einsum("bsk,nk->bsn", x2, w2,
                   precision=jax.lax.Precision.HIGHEST) + b2vec, 0.0)

    out2_f32 = jax.block_until_ready(
        column_parallel_linear(x2, w2, b2vec, compute_dtype=None))
    assert out2_f32.shape == (b2, s2, out2)
    assert jnp.allclose(out2_f32, ref2, atol=5e-3, rtol=5e-3)

    out2_def = jax.block_until_ready(column_parallel_linear(x2, w2, b2vec))
    assert jnp.allclose(out2_def, ref2, atol=6e-2, rtol=6e-2)

    print("KERNEL_OK")
</pallas_src>

<mosaic_0001>
module attributes {stable_mosaic.version = 11 : i64} {
  func.func @_linear_bias_relu_kernel(%arg0: i32, %arg1: i32, %arg2: i32, %arg3: memref<16x32xf32, #tpu.memory_space<vmem>>, %arg4: memref<32x64xf32, #tpu.memory_space<vmem>>, %arg5: memref<1x64xf32, #tpu.memory_space<vmem>>, %arg6: memref<16x64xf32, #tpu.memory_space<vmem>>, %arg7: memref<16x64xf32, #tpu.memory_space<vmem>>) attributes {dimension_semantics = [#tpu.dimension_semantics<parallel>, #tpu.dimension_semantics<parallel>, #tpu.dimension_semantics<arbitrary>], iteration_bounds = array<i64: 1, 1, 1>, scalar_prefetch = 0 : i64, scratch_operands = 1 : i64, tpu.core_type = #tpu.core_type<tc>, window_params = [{transform_indices = @transform_0, window_bounds = array<i64: 16, 32>}, {transform_indices = @transform_1, window_bounds = array<i64: 32, 64>}, {transform_indices = @transform_2, window_bounds = array<i64: 1, 64>}, {transform_indices = @transform_3, window_bounds = array<i64: 16, 64>}]} {
    %c0_i32 = arith.constant 0 : i32
    %0 = arith.cmpi eq, %arg2, %c0_i32 : i32
    %1 = arith.extui %0 : i1 to i32
    %c0_i32_0 = arith.constant 0 : i32
    %2 = arith.cmpi ne, %1, %c0_i32_0 : i32
    scf.if %2 {
      %cst_10 = arith.constant 0.000000e+00 : f32
      %12 = vector.broadcast %cst_10 : f32 to vector<16x64xf32>
      %c0_11 = arith.constant 0 : index
      %c0_12 = arith.constant 0 : index
      %13 = vector.load %arg7[%c0_11, %c0_12] : memref<16x64xf32, #tpu.memory_space<vmem>>, vector<16x64xf32>
      tpu.vector_store %arg7[%c0_11, %c0_12], %12 {strides = array<i32>} : memref<16x64xf32, #tpu.memory_space<vmem>>, vector<16x64xf32>,
    } else {
    }
    %c0 = arith.constant 0 : index
    %c0_1 = arith.constant 0 : index
    %3 = vector.load %arg7[%c0, %c0_1] : memref<16x64xf32, #tpu.memory_space<vmem>>, vector<16x64xf32>
    %c0_2 = arith.constant 0 : index
    %c0_3 = arith.constant 0 : index
    %4 = vector.load %arg3[%c0_2, %c0_3] : memref<16x32xf32, #tpu.memory_space<vmem>>, vector<16x32xf32>
    %c0_4 = arith.constant 0 : index
    %c0_5 = arith.constant 0 : index
    %5 = vector.load %arg4[%c0_4, %c0_5] : memref<32x64xf32, #tpu.memory_space<vmem>>, vector<32x64xf32>
    %cst = arith.constant dense<0.000000e+00> : vector<16x64xf32>
    %6 = tpu.matmul %4, %5, %cst {dimension_numbers = #tpu.dot_dimension_numbers<[1], [0], [0], [1], [0, 0, 1, 1], [], []>} : vector<16x32xf32>, vector<32x64xf32>, vector<16x64xf32> -> vector<16x64xf32>
    %7 = arith.addf %3, %6 : vector<16x64xf32>
    %c0_6 = arith.constant 0 : index
    %c0_7 = arith.constant 0 : index
    %8 = vector.load %arg7[%c0_6, %c0_7] : memref<16x64xf32, #tpu.memory_space<vmem>>, vector<16x64xf32>
    tpu.vector_store %arg7[%c0_6, %c0_7], %7 {strides = array<i32>} : memref<16x64xf32, #tpu.memory_space<vmem>>, vector<16x64xf32>,
    %c0_i32_8 = arith.constant 0 : i32
    %9 = arith.cmpi eq, %arg2, %c0_i32_8 : i32
    %10 = arith.extui %9 : i1 to i32
    %c0_i32_9 = arith.constant 0 : i32
    %11 = arith.cmpi ne, %10, %c0_i32_9 : i32
    scf.if %11 {
      %c0_10 = arith.constant 0 : index
      %c0_11 = arith.constant 0 : index
      %12 = vector.load %arg7[%c0_10, %c0_11] : memref<16x64xf32, #tpu.memory_space<vmem>>, vector<16x64xf32>
      %c0_12 = arith.constant 0 : index
      %c0_13 = arith.constant 0 : index
      %13 = vector.load %arg5[%c0_12, %c0_13] : memref<1x64xf32, #tpu.memory_space<vmem>>, vector<1x64xf32>
      %14 = vector.broadcast %13 : vector<1x64xf32> to vector<16x64xf32>
      %15 = arith.addf %12, %14 : vector<16x64xf32>
      %cst_14 = arith.constant 0.000000e+00 : f32
      %16 = vector.broadcast %cst_14 : f32 to vector<16x64xf32>
      %17 = arith.maximumf %15, %16 : vector<16x64xf32>
      %c0_15 = arith.constant 0 : index
      %c0_16 = arith.constant 0 : index
      %18 = vector.load %arg6[%c0_15, %c0_16] : memref<16x64xf32, #tpu.memory_space<vmem>>, vector<16x64xf32>
      tpu.vector_store %arg6[%c0_15, %c0_16], %17 {strides = array<i32>} : memref<16x64xf32, #tpu.memory_space<vmem>>, vector<16x64xf32>,
    } else {
    }
    return
  }
  func.func @transform_0(%arg0: i32, %arg1: i32, %arg2: i32) -> (i32, i32) {
    %c0_i32 = arith.constant 0 : i32
    return %arg0, %arg2 : i32, i32
  }
  func.func @transform_1(%arg0: i32, %arg1: i32, %arg2: i32) -> (i32, i32) {
    %c0_i32 = arith.constant 0 : i32
    return %arg2, %arg1 : i32, i32
  }
  func.func @transform_2(%arg0: i32, %arg1: i32, %arg2: i32) -> (i32, i32) {
    %c0_i32 = arith.constant 0 : i32
    %c0_i32_0 = arith.constant 0 : i32
    return %c0_i32, %arg1 : i32, i32
  }
  func.func @transform_3(%arg0: i32, %arg1: i32, %arg2: i32) -> (i32, i32) {
    %c0_i32 = arith.constant 0 : i32
    return %arg0, %arg1 : i32, i32
  }
}

</mosaic_0001>

<bundles_post_ra>
// kernel: tpu_custom_call.1
= control target key start
LH: loop header
LB: loop body
LE: loop exit
PB: predicated region body
PF: predicated region fallthrough
CT: control target
= control target key end

     0   :  { %8 = vsyncpa [#allocation4], 0  ;;  %s328_s0 = inlined_call_operand.hbm [shape: f32[16,32], index: 0, kind: input, shape index: {}]   ;;  %s329_s1 = inlined_call_operand.hbm [shape: f32[32,64], index: 1, kind: input, shape index: {}]   ;;  %s330_s2 = inlined_call_operand.vmem [shape: f32[1,64], index: 2, kind: input, shape index: {}]   ;;  %s331_s3 = inlined_call_operand.hbm [shape: f32[16,64], index: 3, kind: output, shape index: {}]  }
   0x1   :  { %9 = vsyncpa [#allocation7], 0 }
   0x2   :  { %10 = vsyncpa [#allocation5], 0  ;;  %s273_s12 = smov [#allocation3]  }
   0x3   :  { %s16_s13 = sshll.u32 %s273_s12, 4  ;;  %s17_s13 = int_to_ptr.vmem [resolvable:$true] %s16_s13 }
   0x4   :  { %s215_s14 = scalar_lea.vmem %s17_s13, 256  ;;  %p220_p1 = scmp.lt.s32.totalorder %s17_s13, %s17_s13 }
   0x5   :  { %p216_p0 = scmp.ne.s32.totalorder %s17_s13, %s215_s14  ;;  %p221_p2 = scmp.lt.s32.totalorder %s215_s14, %s215_s14 }
   0x7   :  { %p222_p3 = por %p221_p2, %p220_p1 }
   0x9   :  { %p223_p4 = pnand %p222_p3, %p216_p0 }
   0xb   :  { %226 = shalt.err (!%p223_p4)
}
   0xc   :  { %s274_s15 = smov 128   ;;  %s275_s16 = smov 8  }
   0xd   :  { %22 = dma.hbm_to_vmem [thread:$0]  %s328_s0, 256, %s17_s13, [#allocation4], %s274_s15, %s274_s15, %s275_s16  }
   0xe   :  { %s276_s19 = smov [#allocation6]  }
   0xf   :  { %s28_s20 = sshll.u32 %s276_s19, 4  ;;  %s29_s20 = int_to_ptr.vmem [resolvable:$true] %s28_s20 }
  0x10   :  { %s235_s21 = scalar_lea.vmem %s29_s20, 512  ;;  %p240_p6 = scmp.lt.s32.totalorder %s29_s20, %s29_s20 }
  0x11   :  { %p236_p5 = scmp.ne.s32.totalorder %s29_s20, %s235_s21  ;;  %p241_p7 = scmp.lt.s32.totalorder %s235_s21, %s235_s21 }
  0x13   :  { %p242_p8 = por %p241_p7, %p240_p6 }
  0x15   :  { %p243_p9 = pnand %p242_p8, %p236_p5 }
  0x17   :  { %246 = shalt.err (!%p243_p9)
}
  0x18   :  { %34 = dma.hbm_to_vmem [thread:$0]  %s329_s1, 512, %s29_s20, [#allocation7], %s274_s15, %s274_s15, %s275_s16  }
  0x19   :  { %267 = dma.done.wait [#allocation4], 256  }
  0x1a   :  { %268 = vsyncadd [#allocation4], 4294967040 }
  0x1b   :  { %269 = dma.done.wait [#allocation7], 512  }
  0x1c   :  { %270 = vsyncadd [#allocation7], 4294966784  ;;  %vm47_vm0 = vcmask 523264   ;;  %v277_v0 = vmov 0.0   ;;  %vm58_vm1 = vcmask 261120   ;;  %v57_v1 = vld [vmem:[#allocation6 + $0x18] sm:$0xff] }
  0x1d   :  { %49 = vst.msk [vmem:[#allocation2 + $0x8] sm:$0xff] %vm47_vm0, %v277_v0  ;;  %48 = vst.msk [vmem:[#allocation2] sm:$0xff] %vm47_vm0, %v277_v0  ;;  %v56_v2 = vld [vmem:[#allocation6 + $0x10] sm:$0xff]  ;;  %190 = vmatprep.subr.mxu0 %v57_v1  ;;  %v55_v4 = vld [vmem:[#allocation6 + $0x8] sm:$0xff]  ;;  %s278_s24 = smov [#allocation8]  }
  0x1e   :  { %v52_v3 = vld [vmem:[#allocation3] sm:$0xff]  ;;  %191 = vmatpush3.msra.mxu0 %v57_v1  ;;  %v54_v5 = vld [vmem:[#allocation6] sm:$0xff]  ;;  %v53_v6 = vld [vmem:[#allocation3 + $0x8] sm:$0xff]  ;;  %s168_s25 = sshll.u32 %s278_s24, 4  ;;  %s169_s25 = int_to_ptr.vmem [resolvable:$true] %s168_s25 }
  0x1f   :  { %198 = vmatprep.mubr.msk.f32.mxu0 %vm58_vm1, %v52_v3  ;;  %192 = vmatprep.subr.mxu0 %v56_v2  ;;  %v183_v13 = vld [vmem:[%s330_s2] ss:$0 sm:$0xff]  ;;  %s247_s26 = scalar_lea.vmem %s169_s25, 256  ;;  %p252_p11 = scmp.lt.s32.totalorder %s169_s25, %s169_s25 }
  0x20   :  { %193 = vmatpush3.msra.mxu0 %v56_v2  ;;  %p248_p10 = scmp.ne.s32.totalorder %s169_s25, %s247_s26  ;;  %p253_p12 = scmp.lt.s32.totalorder %s247_s26, %s247_s26 }
  0x21   :  { %194 = vmatprep.subr.mxu0 %v55_v4 }
  0x22   :  { %195 = vmatpush3.msra.mxu0 %v55_v4  ;;  %p254_p13 = por %p253_p12, %p252_p11 }
  0x23   :  { %196 = vmatprep.subr.mxu0 %v54_v5 }
  0x24   :  { %197 = vmatpush3.msra.mxu0 %v54_v5  ;;  %v51_v7 = vld [vmem:[#allocation2 + $0x8] sm:$0xff]  ;;  %v50_v9 = vld [vmem:[#allocation2] sm:$0xff]  ;;  %p255_p0 = pnand %p254_p13, %p248_p10 }
  0x25   :  { %199 = vmatmul.mubr.msk.f32.vlgmr.msra.gmra.mxu0 %vm58_vm1, %v53_v6 }
  0xe5   :  { %v200_v8 = vpop.f32.mrf.mxu0 }
  0xe6   :  { %v141_v10 = vadd.f32 %v200_v8, %v51_v7 }
  0xe7   :  { %v131_v11 = vpop.f32.mrf.mxu0 }
  0xe8   :  { %144 = vst.msk [vmem:[#allocation2 + $0x8] sm:$0xff] %vm47_vm0, %v141_v10  ;;  %v140_v12 = vadd.f32 %v131_v11, %v50_v9 }
  0xea   :  { %143 = vst.msk [vmem:[#allocation2] sm:$0xff] %vm47_vm0, %v140_v12 }
  0xef   :  { %v149_v14 = vld [vmem:[#allocation2 + $0x8] sm:$0xff] }
  0xf0   :  { %v158_v15 = vadd.f32 %v183_v13, %v149_v14 }
  0xf1   :  { %v148_v16 = vld [vmem:[#allocation2] sm:$0xff] }
  0xf2   :  { %v157_v17 = vadd.f32 %v183_v13, %v148_v16  ;;  %v160_v18 = vmax.f32 %v158_v15, 0.0 }
  0xf4   :  { %v159_v19 = vmax.f32 %v157_v17, 0.0  ;;  %162 = vst.msk [vmem:[#allocation8 + $0x8] sm:$0xff] %vm47_vm0, %v160_v18 }
  0xf6   :  { %161 = vst.msk [vmem:[#allocation8] sm:$0xff] %vm47_vm0, %v159_v19 }
  0xf7   :  { %258 = shalt.err (!%p255_p0)
}
  0xf8   :  { %174 = dma.vmem_to_hbm [thread:$0]  %s169_s25, 256, %s331_s3, [#allocation5], %s274_s15, %s274_s15, %s275_s16  }
  0xf9   :  { %271 = dma.done.wait [#allocation5], 256  }
  0xfa   :  { %272 = vsyncadd [#allocation5], 4294967040 }
  0xfb   :  { %178 = vsyncpa [#allocation4], 1 }
  0xfc   :  { %179 = vsyncpa [#allocation7], 1 }
  0xfd   :  { %180 = vsyncpa [#allocation5], 1 }

</bundles_post_ra>
